<compile_context>
chip_gen: v6e
topology: v6e:2x2x1
jax: 0.10.0
libtpu: 0.0.40
codegen_flags: <defaults>
</compile_context>

<pallas_src>
import functools
import math

import jax
import jax.numpy as jnp
from jax import lax
from jax.experimental import pallas as pl
from jax.experimental.pallas import tpu as pltpu


def _global_block_kernel(x_ref, wqkv_ref, bqkv_ref, wo_ref, bo_ref, o_ref, r_ref,
                         *, planes, seq_len, batch_block):
    """One grid step = `batch_block` batch elements packed as a lane-dense (C, bb*L) slab."""
    C, L = planes, seq_len
    mxu_dtype = wqkv_ref.dtype

    x = x_ref[...]                                # (C, bb*L) f32, lane-dense slab
    xr = jnp.maximum(x, 0.0)                      # ReLU shared by the q/k/v branches

    # Fused, batch-wide QKV projection: (3C, C) @ (C, bb*L) -> (3C, bb*L), f32 accumulation.
    # (1/sqrt(C) is pre-folded into the Wq rows / bq by the wrapper.)
    qkv = jnp.dot(wqkv_ref[...], xr.astype(mxu_dtype),
                  preferred_element_type=jnp.float32) + bqkv_ref[...]
    qkv = qkv.astype(mxu_dtype)                   # single cast pass feeding all attention matmuls

    # Per-batch attention: only the (L, L) math needs a per-sample view (static unroll).
    for b in range(batch_block):
        cols = slice(b * L, (b + 1) * L)
        q_c = qkv[0 * C:1 * C, cols]              # (C, L)
        k_c = qkv[1 * C:2 * C, cols]              # (C, L)
        v_c = qkv[2 * C:3 * C, cols]              # (C, L)

        # scores[l, m] = sum_c q[c, l] * k[c, m]  — trans_a form, no Q transpose/VMEM copy.
        s = lax.dot_general(q_c, k_c, dimension_numbers=(((0,), (0,)), ((), ())),
                            preferred_element_type=jnp.float32)           # (L, L) f32

        # Numerically-stable softmax over keys; reciprocal on the EUP (~2^-12 rel. error).
        m = jnp.max(s, axis=-1, keepdims=True)
        e = jnp.exp(s - m)
        a = e * pl.reciprocal(jnp.sum(e, axis=-1, keepdims=True), approx=True)

        # r[c, l] = sum_m v[c, m] * a[l, m]  — trans_b form, no transposes of A or V.
        r = lax.dot_general(v_c, a.astype(mxu_dtype),
                            dimension_numbers=(((1,), (1,)), ((), ())),
                            preferred_element_type=jnp.float32)           # (C, L) f32
        r_ref[:, cols] = r                        # reassemble the lane-dense slab in VMEM

    # Fused, batch-wide output projection + residual; one lane-dense store to the output.
    out = jnp.dot(wo_ref[...], jnp.maximum(r_ref[...], 0.0).astype(mxu_dtype),
                  preferred_element_type=jnp.float32) + bo_ref[...]       # (C, bb*L)
    o_ref[...] = (x + out).astype(o_ref.dtype)


def _pick_batch_block(batch, planes, seq_len, max_block_bytes=4 << 20):
    """Largest batch tile whose lane width (bb*L) is 128-aligned while keeping >= 2 grid
    steps (DMA double-buffering on all gens; dual-TensorCore sharding on v7x) and a modest
    per-block VMEM footprint.  Falls back to the whole batch in a single step when L is too
    small for any divisor of B to give a 128-multiple lane width (Mosaic requires non-full
    blocks to be lane-aligned)."""
    good = [d for d in range(1, batch) if batch % d == 0
            and (d * seq_len) % 128 == 0
            and d * seq_len * planes * 4 <= max_block_bytes]
    return max(good) if good else batch


def global_block_pallas(x_ncl, params, *, mxu_dtype=jnp.float32, batch_block=None):
    """x_ncl: (B, planes, L) float32 (PyTorch NCL layout). Returns the same layout.

    mxu_dtype: dtype of the MXU operands (weights + casted activations); accumulation stays
    in f32.  bf16 operands are a good default on every generation (v5e's MXU is bf16-native;
    f32 matmuls decompose into multiple bf16 passes); softmax math always stays f32.
    """
    B, C, L = x_ncl.shape
    (wq, bq), (wk, bk), (wv, bv), (wo, bo) = params

    # Pack QKV weights/biases once, in native (C_out, C_in) orientation, folding 1/sqrt(C)
    # into the query rows/bias so the kernel never rescales the (L, L) scores.
    inv_sqrt = 1.0 / math.sqrt(C)
    wqkv = jnp.concatenate([wq * inv_sqrt, wk, wv], axis=0).astype(mxu_dtype)          # (3C, C)
    bqkv = jnp.concatenate([bq * inv_sqrt, bk, bv], axis=0).reshape(3 * C, 1)          # (3C, 1)
    bqkv = bqkv.astype(jnp.float32)
    wo_p = wo.astype(mxu_dtype)                                                        # (C, C)
    bo_p = bo.reshape(C, 1).astype(jnp.float32)                                        # (C, 1)

    if batch_block is None:
        batch_block = _pick_batch_block(B, C, L)
    if B % batch_block != 0:
        raise ValueError(f"batch_block={batch_block} must divide B={B}")
    nb = B // batch_block
    lanes = batch_block * L
    if nb > 1 and lanes % 128 != 0:
        raise ValueError(f"non-full blocks must be 128-lane aligned; got batch_block*L={lanes}")

    # Lane-dense repack: (B, C, L) -> (C, B*L); column b*L + l holds x[b, :, l].
    x_cbl = jnp.transpose(x_ncl, (1, 0, 2)).reshape(C, B * L)

    kernel = functools.partial(_global_block_kernel,
                               planes=C, seq_len=L, batch_block=batch_block)

    slab_spec = pl.BlockSpec((C, lanes), lambda i: (0, i))
    const2 = lambda i: (0, 0)   # weights/biases: constant block index -> stay VMEM resident
    # NOTE: the constant-index weight blocks are still double-buffered by the auto pipeline;
    # at these sizes that is a few KiB.  Single-buffer them only if VMEM headroom gets tight
    # at production C on v7x (64 MiB).
    #
    # VMEM budget: x in + out double-buffered (4 * C*lanes*4 B) + the f32 scratch slab + two
    # copies of the tiny weights; the 4 MiB block cap in _pick_batch_block keeps the total
    # ~20 MiB, under the 32 MiB default scoped limit on v5e/v6e/v7x.  Pass vmem_limit_bytes
    # in CompilerParams before raising that cap.
    out_cbl = pl.pallas_call(
        kernel,
        out_shape=jax.ShapeDtypeStruct((C, B * L), x_ncl.dtype),
        grid_spec=pltpu.PrefetchScalarGridSpec(
            num_scalar_prefetch=0,
            grid=(nb,),
            in_specs=[slab_spec,
                      pl.BlockSpec((3 * C, C), const2),   # packed QKV weights
                      pl.BlockSpec((3 * C, 1), const2),   # packed QKV biases
                      pl.BlockSpec((C, C), const2),       # output-projection weights
                      pl.BlockSpec((C, 1), const2)],      # output-projection bias
            out_specs=slab_spec,
            scratch_shapes=[pltpu.VMEM((C, lanes), jnp.float32)],
        ),
        compiler_params=pltpu.CompilerParams(
            dimension_semantics=("parallel",)),
    )(x_cbl, wqkv, bqkv, wo_p, bo_p)

    # Unpack back to the PyTorch (B, C, L) layout.
    return jnp.transpose(out_cbl.reshape(C, B, L), (1, 0, 2))


def init_params(key, planes):
    """Deterministic init matching the PyTorch Conv1d shapes: W (C, C, 1) -> (C, C), b (C,)."""
    bound = 1.0 / math.sqrt(planes)               # PyTorch default uniform bound for k=1 conv
    keys = jax.random.split(key, 8)
    params = []
    for i in range(4):
        w = jax.random.uniform(keys[2 * i], (planes, planes), jnp.float32, -bound, bound)
        b = jax.random.uniform(keys[2 * i + 1], (planes,), jnp.float32, -bound, bound)
        params.append((w, b))
    return tuple(params)


def global_block_reference(x_ncl, params):
    """Plain-JAX reference mirroring the PyTorch forward exactly."""
    (wq, bq), (wk, bk), (wv, bv), (wo, bo) = params
    B, C, L = x_ncl.shape

    def conv1(x, w, b):                           # x: (B, C, L), w: (Cout, Cin), b: (Cout,)
        return jnp.einsum('oi,bil->bol', w, x) + b[None, :, None]

    xr = jnp.maximum(x_ncl, 0.0)
    q = jnp.transpose(conv1(xr, wq, bq), (0, 2, 1))      # (B, L, C)
    k = conv1(xr, wk, bk)                                # (B, C, L)
    v = jnp.transpose(conv1(xr, wv, bv), (0, 2, 1))      # (B, L, C)
    a = jax.nn.softmax(jnp.einsum('blc,bcm->blm', q, k) / math.sqrt(C), axis=2)
    r = jnp.transpose(jnp.einsum('blm,bmc->blc', a, v), (0, 2, 1))  # (B, C, L)
    r = conv1(jnp.maximum(r, 0.0), wo, bo)
    return x_ncl + r


if __name__ == "__main__":
    key = jax.random.PRNGKey(0)
    k_x, k_p, k_x2 = jax.random.split(key, 3)

    B, planes, L = 2, 32, 16                      # actions / emb are unused in forward
    x = jax.random.normal(k_x, (B, planes, L), dtype=jnp.float32)
    params = init_params(k_p, planes)
    ref = global_block_reference(x, params)

    # f32 MXU operands.
    out_f32 = jax.block_until_ready(global_block_pallas(x, params))
    assert out_f32.shape == (B, planes, L)
    err_f32 = float(jnp.max(jnp.abs(out_f32 - ref)))
    assert err_f32 < 5e-3, f"f32 mismatch vs reference: {err_f32}"

    # bf16 MXU operands with f32 accumulation (good default on v5e/v6e/v7x).
    out_bf16 = jax.block_until_ready(
        global_block_pallas(x, params, mxu_dtype=jnp.bfloat16))
    err_bf16 = float(jnp.max(jnp.abs(out_bf16 - ref)))
    assert err_bf16 < 5e-2, f"bf16 mismatch vs reference: {err_bf16}"

    # Larger batch: exercises the tiled path (128-lane blocks, 2 "parallel" grid steps ->
    # DMA double-buffering everywhere, dual-TensorCore sharding on v7x).
    B2 = 16
    x2 = jax.random.normal(k_x2, (B2, planes, L), dtype=jnp.float32)
    ref2 = global_block_reference(x2, params)
    out2 = jax.block_until_ready(global_block_pallas(x2, params))
    err2 = float(jnp.max(jnp.abs(out2 - ref2)))
    assert err2 < 5e-3, f"tiled f32 mismatch vs reference: {err2}"

    print("KERNEL_OK")
</pallas_src>

<mosaic_0001>
module attributes {stable_mosaic.version = 11 : i64} {
  func.func @_global_block_kernel(%arg0: i32, %arg1: memref<32x32xf32, #tpu.memory_space<vmem>>, %arg2: memref<96x32xf32, #tpu.memory_space<vmem>>, %arg3: memref<96x1xf32, #tpu.memory_space<vmem>>, %arg4: memref<32x32xf32, #tpu.memory_space<vmem>>, %arg5: memref<32x1xf32, #tpu.memory_space<vmem>>, %arg6: memref<32x32xf32, #tpu.memory_space<vmem>>, %arg7: memref<32x32xf32, #tpu.memory_space<vmem>>) attributes {dimension_semantics = [#tpu.dimension_semantics<parallel>], iteration_bounds = array<i64: 1>, scalar_prefetch = 0 : i64, scratch_operands = 1 : i64, tpu.core_type = #tpu.core_type<tc>, window_params = [{transform_indices = @transform_0, window_bounds = array<i64: 32, 32>}, {pipeline_mode = #tpu.pipeline_mode<synchronous>, transform_indices = @transform_1, window_bounds = array<i64: 96, 32>}, {pipeline_mode = #tpu.pipeline_mode<synchronous>, transform_indices = @transform_2, window_bounds = array<i64: 96, 1>}, {pipeline_mode = #tpu.pipeline_mode<synchronous>, transform_indices = @transform_3, window_bounds = array<i64: 32, 32>}, {pipeline_mode = #tpu.pipeline_mode<synchronous>, transform_indices = @transform_4, window_bounds = array<i64: 32, 1>}, {transform_indices = @transform_5, window_bounds = array<i64: 32, 32>}]} {
    %c0 = arith.constant 0 : index
    %c0_0 = arith.constant 0 : index
    %0 = vector.load %arg1[%c0, %c0_0] : memref<32x32xf32, #tpu.memory_space<vmem>>, vector<32x32xf32>
    %cst = arith.constant 0.000000e+00 : f32
    %1 = vector.broadcast %cst : f32 to vector<32x32xf32>
    %2 = arith.maximumf %0, %1 : vector<32x32xf32>
    %c0_1 = arith.constant 0 : index
    %c0_2 = arith.constant 0 : index
    %3 = vector.load %arg2[%c0_1, %c0_2] : memref<96x32xf32, #tpu.memory_space<vmem>>, vector<96x32xf32>
    %cst_3 = arith.constant dense<0.000000e+00> : vector<96x32xf32>
    %4 = tpu.matmul %3, %2, %cst_3 {dimension_numbers = #tpu.dot_dimension_numbers<[1], [0], [0], [1], [0, 0, 1, 1], [], []>} : vector<96x32xf32>, vector<32x32xf32>, vector<96x32xf32> -> vector<96x32xf32>
    %c0_4 = arith.constant 0 : index
    %c0_5 = arith.constant 0 : index
    %5 = vector.load %arg3[%c0_4, %c0_5] : memref<96x1xf32, #tpu.memory_space<vmem>>, vector<96x1xf32>
    %6 = vector.broadcast %5 : vector<96x1xf32> to vector<96x32xf32>
    %7 = arith.addf %4, %6 : vector<96x32xf32>
    %8 = vector.extract_strided_slice %7 {offsets = [0, 0], sizes = [32, 16], strides = [1, 1]} : vector<96x32xf32> to vector<32x16xf32>
    %9 = vector.extract_strided_slice %7 {offsets = [32, 0], sizes = [32, 16], strides = [1, 1]} : vector<96x32xf32> to vector<32x16xf32>
    %10 = vector.extract_strided_slice %7 {offsets = [64, 0], sizes = [32, 16], strides = [1, 1]} : vector<96x32xf32> to vector<32x16xf32>
    %cst_6 = arith.constant dense<0.000000e+00> : vector<16x16xf32>
    %11 = tpu.matmul %8, %9, %cst_6 {dimension_numbers = #tpu.dot_dimension_numbers<[0], [0], [1], [1], [0, 1, 1, 1], [], []>} : vector<32x16xf32>, vector<32x16xf32>, vector<16x16xf32> -> vector<16x16xf32>
    %cst_7 = arith.constant dense<0xFF800000> : vector<16xf32>
    %12 = vector.multi_reduction <maximumf>, %11, %cst_7 [1] : vector<16x16xf32> to vector<16xf32>
    %13 = vector.shape_cast %12 : vector<16xf32> to vector<16x1xf32>
    %14 = vector.broadcast %13 : vector<16x1xf32> to vector<16x16xf32>
    %15 = arith.subf %11, %14 : vector<16x16xf32>
    %16 = math.exp %15 : vector<16x16xf32>
    %cst_8 = arith.constant dense<0.000000e+00> : vector<16xf32>
    %17 = vector.multi_reduction <add>, %16, %cst_8 [1] : vector<16x16xf32> to vector<16xf32>
    %18 = vector.shape_cast %17 : vector<16xf32> to vector<16x1xf32>
    %19 = tpu.reciprocal %18 {approx = true} : vector<16x1xf32> -> vector<16x1xf32>
    %20 = vector.broadcast %19 : vector<16x1xf32> to vector<16x16xf32>
    %21 = arith.mulf %16, %20 : vector<16x16xf32>
    %cst_9 = arith.constant dense<0.000000e+00> : vector<32x16xf32>
    %22 = tpu.matmul %10, %21, %cst_9 {dimension_numbers = #tpu.dot_dimension_numbers<[1], [1], [0], [0], [0, 0, 1, 0], [], []>} : vector<32x16xf32>, vector<16x16xf32>, vector<32x16xf32> -> vector<32x16xf32>
    %c0_10 = arith.constant 0 : index
    %c0_11 = arith.constant 0 : index
    %23 = vector.load %arg7[%c0_10, %c0_11] : memref<32x32xf32, #tpu.memory_space<vmem>>, vector<32x16xf32>
    tpu.vector_store %arg7[%c0_10, %c0_11], %22 {strides = array<i32>} : memref<32x32xf32, #tpu.memory_space<vmem>>, vector<32x16xf32>,
    %24 = vector.extract_strided_slice %7 {offsets = [0, 16], sizes = [32, 16], strides = [1, 1]} : vector<96x32xf32> to vector<32x16xf32>
    %25 = vector.extract_strided_slice %7 {offsets = [32, 16], sizes = [32, 16], strides = [1, 1]} : vector<96x32xf32> to vector<32x16xf32>
    %26 = vector.extract_strided_slice %7 {offsets = [64, 16], sizes = [32, 16], strides = [1, 1]} : vector<96x32xf32> to vector<32x16xf32>
    %cst_12 = arith.constant dense<0.000000e+00> : vector<16x16xf32>
    %27 = tpu.matmul %24, %25, %cst_12 {dimension_numbers = #tpu.dot_dimension_numbers<[0], [0], [1], [1], [0, 1, 1, 1], [], []>} : vector<32x16xf32>, vector<32x16xf32>, vector<16x16xf32> -> vector<16x16xf32>
    %cst_13 = arith.constant dense<0xFF800000> : vector<16xf32>
    %28 = vector.multi_reduction <maximumf>, %27, %cst_13 [1] : vector<16x16xf32> to vector<16xf32>
    %29 = vector.shape_cast %28 : vector<16xf32> to vector<16x1xf32>
    %30 = vector.broadcast %29 : vector<16x1xf32> to vector<16x16xf32>
    %31 = arith.subf %27, %30 : vector<16x16xf32>
    %32 = math.exp %31 : vector<16x16xf32>
    %cst_14 = arith.constant dense<0.000000e+00> : vector<16xf32>
    %33 = vector.multi_reduction <add>, %32, %cst_14 [1] : vector<16x16xf32> to vector<16xf32>
    %34 = vector.shape_cast %33 : vector<16xf32> to vector<16x1xf32>
    %35 = tpu.reciprocal %34 {approx = true} : vector<16x1xf32> -> vector<16x1xf32>
    %36 = vector.broadcast %35 : vector<16x1xf32> to vector<16x16xf32>
    %37 = arith.mulf %32, %36 : vector<16x16xf32>
    %cst_15 = arith.constant dense<0.000000e+00> : vector<32x16xf32>
    %38 = tpu.matmul %26, %37, %cst_15 {dimension_numbers = #tpu.dot_dimension_numbers<[1], [1], [0], [0], [0, 0, 1, 0], [], []>} : vector<32x16xf32>, vector<16x16xf32>, vector<32x16xf32> -> vector<32x16xf32>
    %c0_16 = arith.constant 0 : index
    %c16 = arith.constant 16 : index
    %39 = vector.load %arg7[%c0_16, %c16] : memref<32x32xf32, #tpu.memory_space<vmem>>, vector<32x16xf32>
    tpu.vector_store %arg7[%c0_16, %c16], %38 {strides = array<i32>} : memref<32x32xf32, #tpu.memory_space<vmem>>, vector<32x16xf32>,
    %c0_17 = arith.constant 0 : index
    %c0_18 = arith.constant 0 : index
    %40 = vector.load %arg4[%c0_17, %c0_18] : memref<32x32xf32, #tpu.memory_space<vmem>>, vector<32x32xf32>
    %c0_19 = arith.constant 0 : index
    %c0_20 = arith.constant 0 : index
    %41 = vector.load %arg7[%c0_19, %c0_20] : memref<32x32xf32, #tpu.memory_space<vmem>>, vector<32x32xf32>
    %cst_21 = arith.constant 0.000000e+00 : f32
    %42 = vector.broadcast %cst_21 : f32 to vector<32x32xf32>
    %43 = arith.maximumf %41, %42 : vector<32x32xf32>
    %cst_22 = arith.constant dense<0.000000e+00> : vector<32x32xf32>
    %44 = tpu.matmul %40, %43, %cst_22 {dimension_numbers = #tpu.dot_dimension_numbers<[1], [0], [0], [1], [0, 0, 1, 1], [], []>} : vector<32x32xf32>, vector<32x32xf32>, vector<32x32xf32> -> vector<32x32xf32>
    %c0_23 = arith.constant 0 : index
    %c0_24 = arith.constant 0 : index
    %45 = vector.load %arg5[%c0_23, %c0_24] : memref<32x1xf32, #tpu.memory_space<vmem>>, vector<32x1xf32>
    %46 = vector.broadcast %45 : vector<32x1xf32> to vector<32x32xf32>
    %47 = arith.addf %44, %46 : vector<32x32xf32>
    %48 = arith.addf %0, %47 : vector<32x32xf32>
    %c0_25 = arith.constant 0 : index
    %c0_26 = arith.constant 0 : index
    %49 = vector.load %arg6[%c0_25, %c0_26] : memref<32x32xf32, #tpu.memory_space<vmem>>, vector<32x32xf32>
    tpu.vector_store %arg6[%c0_25, %c0_26], %48 {strides = array<i32>} : memref<32x32xf32, #tpu.memory_space<vmem>>, vector<32x32xf32>,
    return
  }
  func.func @transform_0(%arg0: i32) -> (i32, i32) {
    %c0_i32 = arith.constant 0 : i32
    %c0_i32_0 = arith.constant 0 : i32
    return %c0_i32, %arg0 : i32, i32
  }
  func.func @transform_1(%arg0: i32) -> (i32, i32) {
    %c0_i32 = arith.constant 0 : i32
    %c0_i32_0 = arith.constant 0 : i32
    %c0_i32_1 = arith.constant 0 : i32
    return %c0_i32, %c0_i32_0 : i32, i32
  }
  func.func @transform_2(%arg0: i32) -> (i32, i32) {
    %c0_i32 = arith.constant 0 : i32
    %c0_i32_0 = arith.constant 0 : i32
    %c0_i32_1 = arith.constant 0 : i32
    return %c0_i32, %c0_i32_0 : i32, i32
  }
  func.func @transform_3(%arg0: i32) -> (i32, i32) {
    %c0_i32 = arith.constant 0 : i32
    %c0_i32_0 = arith.constant 0 : i32
    %c0_i32_1 = arith.constant 0 : i32
    return %c0_i32, %c0_i32_0 : i32, i32
  }
  func.func @transform_4(%arg0: i32) -> (i32, i32) {
    %c0_i32 = arith.constant 0 : i32
    %c0_i32_0 = arith.constant 0 : i32
    %c0_i32_1 = arith.constant 0 : i32
    return %c0_i32, %c0_i32_0 : i32, i32
  }
  func.func @transform_5(%arg0: i32) -> (i32, i32) {
    %c0_i32 = arith.constant 0 : i32
    %c0_i32_0 = arith.constant 0 : i32
    return %c0_i32, %arg0 : i32, i32
  }
}

</mosaic_0001>

<bundles_post_ra>
// kernel: tpu_custom_call.1
= control target key start
LH: loop header
LB: loop body
LE: loop exit
PB: predicated region body
PF: predicated region fallthrough
CT: control target
= control target key end

     0   :  { %vm113_vm0 = vcmask 261120   ;;  %v1179_v6 = vmov 0   ;;  %s1410_s0 = inlined_call_operand.vmem [shape: f32[32,32], index: 0, kind: input, shape index: {}]   ;;  %s1411_s1 = inlined_call_operand.vmem [shape: f32[96,32], index: 1, kind: input, shape index: {}]   ;;  %s1412_s2 = inlined_call_operand.vmem [shape: f32[96,1], index: 2, kind: input, shape index: {}]   ;;  %s1413_s3 = inlined_call_operand.vmem [shape: f32[32,32], index: 3, kind: input, shape index: {}]   ;;  %s1414_s4 = inlined_call_operand.vmem [shape: f32[32,1], index: 4, kind: input, shape index: {}]   ;;  %s1415_s5 = inlined_call_operand.hbm [shape: f32[32,32], index: 5, kind: output, shape index: {}]  }
   0x1   :  { %v1218_v0 = vld [vmem:[%s1410_s0 + $0x18] sm:$0xff]  ;;  %v1223_v1 = vld [vmem:[%s1410_s0 + $0x10] sm:$0xff]  ;;  %v1228_v2 = vld [vmem:[%s1410_s0 + $0x8] sm:$0xff]  ;;  %1139 = vset.pattern.permute.xlu0 %v1179_v6  ;;  %1140 = vset.pattern.permute.xlu1 %v1179_v6 }
   0x2   :  { %v28_v3 = vmax.f32 %v1218_v0, 0.0  ;;  %v27_v4 = vmax.f32 %v1223_v1, 0.0  ;;  %v29_v5 = vld [vmem:[%s1411_s1] sm:$0xff]  ;;  %v26_v8 = vmax.f32 %v1228_v2, 0.0  ;;  %v43_v10 = vld [vmem:[%s1412_s2 + $0x10] sm:$0xff]  ;;  %v42_v12 = vld [vmem:[%s1412_s2 + $0x8] sm:$0xff] }
   0x3   :  { %v1238_v7 = vld [vmem:[%s1410_s0] sm:$0xff]  ;;  %1058 = vmatprep.mubr.msk.f32.mxu0 %vm113_vm0, %v29_v5  ;;  %65 = vperm.xlu1 %1140, %v43_v10   ;;  %v44_v13 = vld [vmem:[%s1412_s2 + $0x18] sm:$0xff]  ;;  %v30_v14 = vld [vmem:[%s1411_s1 + $0x8] sm:$0xff] }
   0x4   :  { %1050 = vmatprep.subr.mxu0 %v28_v3  ;;  %v41_v9 = vld [vmem:[%s1412_s2] sm:$0xff]  ;;  %v25_v11 = vmax.f32 %v1238_v7, 0.0 }
   0x5   :  { %1051 = vmatpush3.msra.mxu0 %v28_v3  ;;  %55 = vperm.xlu0 %1139, %v41_v9  }
   0x6   :  { %1052 = vmatprep.subr.mxu0 %v27_v4 }
   0x7   :  { %1053 = vmatpush3.msra.mxu0 %v27_v4 }
   0x8   :  { %1054 = vmatprep.subr.mxu0 %v26_v8 }
   0x9   :  { %1055 = vmatpush3.msra.mxu0 %v26_v8 }
   0xa   :  { %10 = vsyncpa [#allocation4], 0  ;;  %1056 = vmatprep.subr.mxu0 %v25_v11  ;;  %v31_v15 = vld [vmem:[%s1411_s1 + $0x10] sm:$0xff]  ;;  %60 = vperm.xlu0 %1139, %v42_v12   ;;  %v48_v16 = vld [vmem:[%s1412_s2 + $0x38] sm:$0xff]  ;;  %vm388_vm1 = vcmask 130048   ;;  %vm808_vm2 = vcmask 261248  }
   0xb   :  { %1057 = vmatpush3.msra.mxu0 %v25_v11  ;;  %70 = vperm.xlu1 %1140, %v44_v13   ;;  %v47_v17 = vld [vmem:[%s1412_s2 + $0x30] sm:$0xff]  ;;  %v32_v18 = vld [vmem:[%s1411_s1 + $0x18] sm:$0xff]  ;;  %v33_v19 = vld [vmem:[%s1411_s1 + $0x20] sm:$0xff]  ;;  %s1182_s11 = smov [#allocation3]  }
   0xc   :  { %1059 = vmatmul.mubr.msk.f32.vlgmr.msra.gmra.mxu0 %vm113_vm0, %v30_v14  ;;  %v46_v20 = vld [vmem:[%s1412_s2 + $0x28] sm:$0xff]  ;;  %v45_v21 = vld [vmem:[%s1412_s2 + $0x20] sm:$0xff]  ;;  %v35_v23 = vld [vmem:[%s1411_s1 + $0x30] sm:$0xff]  ;;  %s959_s12 = sshll.u32 %s1182_s11, 4  ;;  %s960_s12 = int_to_ptr.vmem [resolvable:$true] %s959_s12 }
   0xd   :  { %1061 = vmatprep.mubr.msk.f32.mxu0 %vm113_vm0, %v31_v15  ;;  %v34_v22 = vld [vmem:[%s1411_s1 + $0x28] sm:$0xff]  ;;  %v36_v24 = vld [vmem:[%s1411_s1 + $0x38] sm:$0xff]  ;;  %v37_v25 = vld [vmem:[%s1411_s1 + $0x40] sm:$0xff]  ;;  %p1162_p1 = scmp.lt.s32.totalorder %s960_s12, %s960_s12 }
   0xe   :  { %90 = vperm.xlu0 %1139, %v48_v16   ;;  %v38_v26 = vld [vmem:[%s1411_s1 + $0x48] sm:$0xff]  ;;  %v39_v27 = vld [vmem:[%s1411_s1 + $0x50] sm:$0xff]  ;;  %v40_v28 = vld [vmem:[%s1411_s1 + $0x58] sm:$0xff]  ;;  %s1180_s1 = smov 112  }
   0xf   :  { %85 = vperm.xlu1 %1140, %v47_v17   ;;  %v52_v53 = vld [vmem:[%s1412_s2 + $0x58] sm:$0xff]  ;;  %v49_v60 = vld [vmem:[%s1412_s2 + $0x40] sm:$0xff]  ;;  %v50_v61 = vld [vmem:[%s1412_s2 + $0x48] sm:$0xff] }
  0x10   :  { %1062 = vmatmul.mubr.msk.f32.gmra.mxu0 %vm113_vm0, %v32_v18  ;;  %v51_v62 = vld [vmem:[%s1412_s2 + $0x50] sm:$0xff]  ;;  %s1181_s2 = smov 16  }
  0x11   :  { %1064 = vmatprep.mubr.msk.f32.mxu0 %vm113_vm0, %v33_v19 }
  0x12   :  { %80 = vperm.xlu0 %1139, %v46_v20  }
  0x13   :  { %75 = vperm.xlu1 %1140, %v45_v21  }
  0x14   :  { %1065 = vmatmul.mubr.msk.f32.gmra.mxu0 %vm113_vm0, %v34_v22 }
  0x15   :  { %1067 = vmatprep.mubr.msk.f32.mxu0 %vm113_vm0, %v35_v23 }
  0x18   :  { %1068 = vmatmul.mubr.msk.f32.gmra.mxu0 %vm113_vm0, %v36_v24 }
  0x19   :  { %1070 = vmatprep.mubr.msk.f32.mxu0 %vm113_vm0, %v37_v25 }
  0x1c   :  { %1071 = vmatmul.mubr.msk.f32.gmra.mxu0 %vm113_vm0, %v38_v26 }
  0x1d   :  { %1073 = vmatprep.mubr.msk.f32.mxu0 %vm113_vm0, %v39_v27 }
  0x20   :  { %1074 = vmatmul.mubr.msk.f32.gmra.mxu0 %vm113_vm0, %v40_v28 }
  0x7e   :  { %v66_v30 = vpop.permute.xlu1 %65 }
  0x80   :  { %v56_v29 = vpop.permute.xlu0 %55 }
  0x85   :  { %v61_v33 = vpop.permute.xlu0 %60 }
  0x86   :  { %v71_v35 = vpop.permute.xlu1 %70 }
  0x89   :  { %v91_v40 = vpop.permute.xlu0 %90 }
  0x8a   :  { %v86_v41 = vpop.permute.xlu1 %85 }
  0x8d   :  { %v81_v49 = vpop.permute.xlu0 %80 }
  0x8e   :  { %v76_v50 = vpop.permute.xlu1 %75 }
  0xcc   :  { %v1060_v31 = vpop.f32.mrf.mxu0 }
  0xcd   :  { %v222_v38 = vadd.f32 %v1060_v31, %v61_v33 }
  0xce   :  { %v216_v32 = vpop.f32.mrf.mxu0 }
  0xcf   :  { %v217_v34 = vadd.f32 %v216_v32, %v56_v29 }
  0xd0   :  { %v1063_v36 = vpop.f32.mrf.mxu0 }
  0xd1   :  { %275 = vxpose.xlu0.b32.start [1/4] (short) (narrow) %v217_v34, 16  ;;  %v232_v47 = vadd.f32 %v1063_v36, %v71_v35 }
  0xd2   :  { %v226_v37 = vpop.f32.mrf.mxu0 }
  0xd3   :  { %v227_v43 = vadd.f32 %v226_v37, %v66_v30 }
  0xd4   :  { %v1066_v39 = vpop.f32.mrf.mxu0 }
  0xd5   :  { %276 = vxpose.xlu0.b32.cont [2/4] (short) (narrow) %v222_v38, 16  ;;  %v242_v51 = vadd.f32 %v1066_v39, %v81_v49 }
  0xd6   :  { %v236_v42 = vpop.f32.mrf.mxu0 }
  0xd7   :  { %v237_v52 = vadd.f32 %v236_v42, %v76_v50 }
  0xd8   :  { %v1069_v44 = vpop.f32.mrf.mxu0 }
  0xd9   :  { %v252_v45 = vadd.f32 %v1069_v44, %v91_v40  ;;  %277 = vxpose.xlu0.b32.cont [3/4] (short) (narrow) %v227_v43, 16 }
  0xda   :  { %v246_v46 = vpop.f32.mrf.mxu0 }
  0xdb   :  { %v247_v48 = vadd.f32 %v246_v46, %v86_v41  ;;  %1076 = vmatprep.subr.mxu1 %v252_v45 }
  0xdc   :  { %1077 = vmatpush3.msra.mxu1 %v252_v45  ;;  %v1072_v11 = vpop.f32.mrf.mxu0 }
  0xdd   :  { %1078 = vmatprep.subr.mxu1 %v247_v48  ;;  %278 = vxpose.xlu0.b32.end [4/4] (short) (narrow) %v232_v47, 16 }
  0xde   :  { %1079 = vmatpush3.msra.mxu1 %v247_v48  ;;  %v256_v15 = vpop.f32.mrf.mxu0 }
  0xdf   :  { %1080 = vmatprep.subr.mxu1 %v242_v51 }
  0xe0   :  { %1081 = vmatpush3.msra.mxu1 %v242_v51  ;;  %v1075_v32 = vpop.f32.mrf.mxu0 }
  0xe1   :  { %1082 = vmatprep.subr.mxu1 %v237_v52 }
  0xe2   :  { %1083 = vmatpush3.msra.mxu1 %v237_v52 }
 0x106   :  { %522 = vrot.lane.b32.xlu0 %v217_v34, %s1180_s1  ;;  %v266_v34 = vpop.f32.mrf.mxu0 }
 0x10a   :  { %110 = vperm.xlu0 %1139, %v52_v53  }
 0x10e   :  { %574 = vrot.lane.b32.xlu0 %v247_v48, %s1180_s1 }
 0x112   :  { %570 = vrot.lane.b32.xlu0 %v237_v52, %s1180_s1 }
 0x14d   :  { %v291_v54 = vpop.trf.xlu0 }
 0x14e   :  { %1084 = vmatprep.mubr.msk.f32.mxu1 %vm113_vm0, %v291_v54 }
 0x151   :  { %v292_v55 = vpop.trf.xlu0 }
 0x152   :  { %1085 = vmatmul.mubr.msk.f32.vlgmr.msra.gmra.mxu1 %vm113_vm0, %v292_v55 }
 0x178   :  { %v523_v20 = vpop.permute.xlu0 %522 }
 0x185   :  { %v111_v31 = vpop.permute.xlu0 %110 }
 0x186   :  { %v272_v37 = vadd.f32 %v1075_v32, %v111_v31  ;;  %v815_v31 = vld [vmem:[%s1413_s3 + $0x10] sm:$0xff]  ;;  %v816_v32 = vld [vmem:[%s1413_s3 + $0x18] sm:$0xff] }
 0x189   :  { %v575_v35 = vpop.permute.xlu0 %574 }
 0x212   :  { %v1086_v56 = vpop.f32.mrf.mxu1 }
 0x213   :  { %v392_v57 = vsel %vm388_vm1, %v1086_v56, -inf }
 0x214   :  { %393 = vmax.xlane.f32.xlu1 %v392_v57  ;;  %v379_v58 = vpop.f32.mrf.mxu1 }
 0x215   :  { %v389_v59 = vsel %vm388_vm1, %v379_v58, -inf }
 0x218   :  { %390 = vmax.xlane.f32.xlu1 %v389_v59 }
 0x229   :  { %524 = vrot.lane.b32.xlu1 %v222_v38, %s1180_s1  ;;  %v571_v38 = vpop.permute.xlu0 %570 }
 0x22d   :  { %526 = vrot.lane.b32.xlu1 %v227_v43, %s1180_s1 }
 0x231   :  { %528 = vrot.lane.b32.xlu1 %v232_v47, %s1180_s1 }
 0x235   :  { %95 = vperm.xlu1 %1140, %v49_v60  }
 0x239   :  { %100 = vperm.xlu1 %1140, %v50_v61  }
 0x23d   :  { %105 = vperm.xlu1 %1140, %v51_v62  }
 0x241   :  { %576 = vrot.lane.b32.xlu1 %v252_v45, %s1180_s1 }
 0x245   :  { %572 = vrot.lane.b32.xlu1 %v242_v51, %s1180_s1 }
 0x29d   :  { %v394_v63 = vpop.xlane.xlu1 %393 }
 0x29e   :  { %v396_v3 = vsub.f32 %v1086_v56, %v394_v63 }
 0x2a0   :  { %v399_v4 = vmul.f32 1.442695, %v396_v3 }
 0x2a1   :  { %v391_v5 = vpop.xlane.xlu1 %390 }
 0x2a2   :  { %1141 = vpow2.f32 %v399_v4  ;;  %v395_v6 = vsub.f32 %v379_v58, %v391_v5 }
 0x2a4   :  { %v397_v8 = vmul.f32 1.442695, %v395_v6 }
 0x2a5   :  { %v525_v9 = vpop.permute.xlu1 %524 }
 0x2a6   :  { %1143 = vpow2.f32 %v397_v8 }
 0x2a9   :  { %v527_v10 = vpop.permute.xlu1 %526 }
 0x2ad   :  { %v529_v12 = vpop.permute.xlu1 %528 }
 0x2af   :  { %v1142_v13 = vpop.eup %1141 }
 0x2b0   :  { %v404_v14 = vsel %vm388_vm1, %v1142_v13, 0.0 }
 0x2b1   :  { %405 = vadd.xlane.f32.xlu1 %v404_v14  ;;  %v96_v16 = vpop.permute.xlu1 %95  ;;  %v828_v14 = vld [vmem:[%s1414_s4 + $0x18] sm:$0xff] }
 0x2b2   :  { %v1336_v17 = vadd.f32 %v256_v15, %v96_v16  ;;  %v813_v15 = vld [vmem:[%s1413_s3] sm:$0xff] }
 0x2b3   :  { %v1144_v18 = vpop.eup %1143  ;;  %v825_v16 = vld [vmem:[%s1414_s4] sm:$0xff] }
 0x2b4   :  { %1091 = vmatprep.mubr.msk.f32.mxu1 %vm388_vm1, %v1336_v17  ;;  %v401_v19 = vsel %vm388_vm1, %v1144_v18, 0.0 }
 0x2b5   :  { %402 = vadd.xlane.f32.xlu1 %v401_v19  ;;  %v101_v21 = vpop.permute.xlu1 %100 }
 0x2b6   :  { %v262_v22 = vadd.f32 %v1072_v11, %v101_v21 }
 0x2b9   :  { %v106_v23 = vpop.permute.xlu1 %105 }
 0x2ba   :  { %v267_v36 = vadd.f32 %v266_v34, %v106_v23 }
 0x2bd   :  { %v577_v24 = vpop.permute.xlu1 %576 }
 0x2c1   :  { %v573_v25 = vpop.permute.xlu1 %572 }
 0x2e8   :  { %534 = vxpose.xlu1.b32.start [1/4] (short) (narrow) %v523_v20, 16 }
 0x2ec   :  { %535 = vxpose.xlu1.b32.cont [2/4] (short) (narrow) %v525_v9, 16 }
 0x2f0   :  { %536 = vxpose.xlu1.b32.cont [3/4] (short) (narrow) %v527_v10, 16 }
 0x2f4   :  { %537 = vxpose.xlu1.b32.end [4/4] (short) (narrow) %v529_v12, 16  ;;  %v826_v12 = vld [vmem:[%s1414_s4 + $0x8] sm:$0xff] }
 0x312   :  { %687 = vrot.lane.b32.xlu1 %v262_v22, %s1180_s1 }
 0x33a   :  { %v406_v26 = vpop.xlane.xlu1 %405 }
 0x33b   :  { %1145 = vrcp.f32 %v406_v26 }
 0x33e   :  { %v403_v27 = vpop.xlane.xlu1 %402 }
 0x33f   :  { %1147 = vrcp.f32 %v403_v27 }
 0x348   :  { %v1146_v28 = vpop.eup %1145 }
 0x349   :  { %v410_v29 = vmul.f32 %v1146_v28, %v1142_v13 }
 0x34b   :  { %1087 = vmatprep.subr.msk.mxu1 %vm388_vm1, %v410_v29 }
 0x34c   :  { %v1148_v30 = vpop.eup %1147  ;;  %1088 = vmatpush3.xpose.msk.msra.mxu1 %vm388_vm1, %v410_v29 }
 0x34d   :  { %v409_v33 = vmul.f32 %v1148_v30, %v1144_v18  ;;  %v814_v30 = vld [vmem:[%s1413_s3 + $0x8] sm:$0xff]  ;;  %s1157_s3 = scalar_lea.vmem %s960_s12, 512 }
 0x34e   :  { %p1158_p0 = scmp.ne.s32.totalorder %s960_s12, %s1157_s3  ;;  %p1163_p2 = scmp.lt.s32.totalorder %s1157_s3, %s1157_s3 }
 0x34f   :  { %1089 = vmatprep.subr.msk.mxu1 %vm388_vm1, %v409_v33 }
 0x350   :  { %1090 = vmatpush3.xpose.msk.msra.mxu1 %vm388_vm1, %v409_v33  ;;  %p1164_p3 = por %p1163_p2, %p1162_p1 }
 0x351   :  { %1097 = vmatprep.subr.mxu1 %v577_v24 }
 0x352   :  { %p1165_p4 = pnand %p1164_p3, %p1158_p0 }
 0x353   :  { %1092 = vmatmul.mubr.msk.f32.vlgmr.msra.gmra.mxu1 %vm388_vm1, %v262_v22 }
 0x354   :  { %1094 = vmatprep.mubr.msk.f32.mxu1 %vm388_vm1, %v267_v36  ;;  %1098 = vmatpush3.msra.mxu1 %v577_v24 }
 0x355   :  { %1099 = vmatprep.subr.mxu1 %v575_v35 }
 0x356   :  { %1100 = vmatpush3.msra.mxu1 %v575_v35 }
 0x357   :  { %1095 = vmatmul.mubr.msk.f32.gmra.mxu1 %vm388_vm1, %v272_v37  ;;  %1101 = vmatprep.subr.mxu1 %v573_v25 }
 0x358   :  { %1102 = vmatpush3.msra.mxu1 %v573_v25 }
 0x359   :  { %1103 = vmatprep.subr.mxu1 %v571_v38 }
 0x35a   :  { %1104 = vmatpush3.msra.mxu1 %v571_v38 }
 0x364   :  { %v550_v39 = vpop.trf.xlu1 }
 0x365   :  { %1105 = vmatprep.mubr.msk.f32.mxu1 %vm113_vm0, %v550_v39 }
 0x368   :  { %v551_v40 = vpop.trf.xlu1 }
 0x369   :  { %1106 = vmatmul.mubr.msk.f32.vlgmr.msra.gmra.mxu1 %vm113_vm0, %v551_v40 }
 0x36a   :  { %1126 = vmatprep.mubr.msk.f32.mxu1 %vm113_vm0, %v813_v15 }
 0x384   :  { %v688_v6 = vpop.permute.xlu1 %687 }
 0x413   :  { %v1093_v41 = vpop.f32.mrf.mxu1 }
 0x414   :  { %515 = vst.msk [vmem:[#allocation2 + $0x8] sm:$0xff] %vm388_vm1, %v1093_v41 }
 0x415   :  { %v495_v42 = vpop.f32.mrf.mxu1 }
 0x416   :  { %514 = vst.msk [vmem:[#allocation2] sm:$0xff] %vm388_vm1, %v495_v42 }
 0x417   :  { %v1096_v43 = vpop.f32.mrf.mxu1 }
 0x418   :  { %517 = vst.msk [vmem:[#allocation2 + $0x18] sm:$0xff] %vm388_vm1, %v1096_v43 }
 0x419   :  { %v505_v44 = vpop.f32.mrf.mxu1 }
 0x41a   :  { %516 = vst.msk [vmem:[#allocation2 + $0x10] sm:$0xff] %vm388_vm1, %v505_v44 }
 0x429   :  { %v1107_v45 = vpop.f32.mrf.mxu1 }
 0x42a   :  { %v666_v46 = vsel %vm388_vm1, %v1107_v45, -inf }
 0x42b   :  { %667 = vmax.xlane.f32.xlu0 %v666_v46  ;;  %v654_v47 = vpop.f32.mrf.mxu1 }
 0x42c   :  { %v663_v48 = vsel %vm388_vm1, %v654_v47, -inf }
 0x42f   :  { %664 = vmax.xlane.f32.xlu0 %v663_v48 }
 0x4b4   :  { %v668_v49 = vpop.xlane.xlu0 %667 }
 0x4b5   :  { %v670_v50 = vsub.f32 %v1107_v45, %v668_v49 }
 0x4b7   :  { %v673_v51 = vmul.f32 1.442695, %v670_v50 }
 0x4b8   :  { %v665_v52 = vpop.xlane.xlu0 %664 }
 0x4b9   :  { %1149 = vpow2.f32 %v673_v51  ;;  %v669_v53 = vsub.f32 %v654_v47, %v665_v52 }
 0x4bb   :  { %v671_v54 = vmul.f32 1.442695, %v669_v53 }
 0x4bd   :  { %1151 = vpow2.f32 %v671_v54 }
 0x4c6   :  { %v1150_v55 = vpop.eup %1149 }
 0x4c7   :  { %v678_v56 = vsel %vm388_vm1, %v1150_v55, 0.0 }
 0x4c8   :  { %679 = vadd.xlane.f32.xlu0 %v678_v56 }
 0x4ca   :  { %v1152_v57 = vpop.eup %1151 }
 0x4cb   :  { %v675_v58 = vsel %vm388_vm1, %v1152_v57, 0.0 }
 0x4cc   :  { %676 = vadd.xlane.f32.xlu0 %v675_v58 }
 0x4e2   :  { %685 = vrot.lane.b32.xlu0 %v1336_v17, %s1180_s1  ;;  %v827_v17 = vld [vmem:[%s1414_s4 + $0x10] sm:$0xff] }
 0x4e6   :  { %689 = vrot.lane.b32.xlu0 %v267_v36, %s1180_s1 }
 0x4ea   :  { %691 = vrot.lane.b32.xlu0 %v272_v37, %s1180_s1 }
 0x551   :  { %v680_v59 = vpop.xlane.xlu0 %679 }
 0x552   :  { %1153 = vrcp.f32 %v680_v59 }
 0x555   :  { %v677_v60 = vpop.xlane.xlu0 %676 }
 0x556   :  { %1155 = vrcp.f32 %v677_v60 }
 0x559   :  { %v686_v61 = vpop.permute.xlu0 %685 }
 0x55a   :  { %1112 = vmatprep.mubr.msk.f32.mxu0 %vm388_vm1, %v686_v61 }
 0x55d   :  { %v690_v5 = vpop.permute.xlu0 %689 }
 0x55f   :  { %v1154_v62 = vpop.eup %1153 }
 0x560   :  { %v684_v63 = vmul.f32 %v1154_v62, %v1150_v55 }
 0x561   :  { %v692_v8 = vpop.permute.xlu0 %691 }
 0x562   :  { %1108 = vmatprep.subr.msk.mxu0 %vm388_vm1, %v684_v63 }
 0x563   :  { %v1156_v3 = vpop.eup %1155  ;;  %1109 = vmatpush3.xpose.msk.msra.mxu0 %vm388_vm1, %v684_v63 }
 0x564   :  { %v683_v4 = vmul.f32 %v1156_v3, %v1152_v57 }
 0x566   :  { %1110 = vmatprep.subr.msk.mxu0 %vm388_vm1, %v683_v4 }
 0x567   :  { %1111 = vmatpush3.xpose.msk.msra.mxu0 %vm388_vm1, %v683_v4 }
 0x56a   :  { %1113 = vmatmul.mubr.msk.f32.vlgmr.msra.gmra.mxu0 %vm388_vm1, %v688_v6 }
 0x56b   :  { %1115 = vmatprep.mubr.msk.f32.mxu0 %vm388_vm1, %v690_v5 }
 0x56e   :  { %1116 = vmatmul.mubr.msk.f32.gmra.mxu0 %vm388_vm1, %v692_v8 }
 0x62a   :  { %v1114_v9 = vpop.f32.mrf.mxu0 }
 0x62c   :  { %v773_v10 = vpop.f32.mrf.mxu0 }
 0x62d   :  { %796 = vrot.lane.b32.xlu1 %v773_v10, %s1181_s2 }
 0x62e   :  { %v1117_v11 = vpop.f32.mrf.mxu0 }
 0x62f   :  { %802 = vrot.lane.b32.xlu0 %v1117_v11, %s1181_s2 }
 0x630   :  { %v783_v13 = vpop.f32.mrf.mxu0 }
 0x631   :  { %836 = vperm.xlu1 %1140, %v826_v12  }
 0x633   :  { %800 = vrot.lane.b32.xlu0 %v783_v13, %s1181_s2 }
 0x635   :  { %846 = vperm.xlu1 %1140, %v828_v14  }
 0x637   :  { %798 = vrot.lane.b32.xlu0 %v1114_v9, %s1181_s2 }
 0x63b   :  { %831 = vperm.xlu0 %1139, %v825_v16  }
 0x63f   :  { %841 = vperm.xlu0 %1139, %v827_v17  }
 0x69f   :  { %v797_v18 = vpop.permute.xlu1 %796 }
 0x6a0   :  { %809 = vst.msk [vmem:[#allocation2] sm:$0xff] %vm808_vm2, %v797_v18 }
 0x6a1   :  { %v803_v19 = vpop.permute.xlu0 %802 }
 0x6a2   :  { %812 = vst.msk [vmem:[#allocation2 + $0x18] sm:$0xff] %vm808_vm2, %v803_v19 }
 0x6a5   :  { %v801_v20 = vpop.permute.xlu0 %800 }
 0x6a6   :  { %811 = vst.msk [vmem:[#allocation2 + $0x10] sm:$0xff] %vm808_vm2, %v801_v20 }
 0x6a7   :  { %v817_v27 = vld [vmem:[#allocation2] sm:$0xff] }
 0x6a8   :  { %v821_v29 = vmax.f32 %v817_v27, 0.0 }
 0x6a9   :  { %v799_v21 = vpop.permute.xlu0 %798  ;;  %v820_v22 = vld [vmem:[#allocation2 + $0x18] sm:$0xff] }
 0x6aa   :  { %810 = vst.msk [vmem:[#allocation2 + $0x8] sm:$0xff] %vm808_vm2, %v799_v21  ;;  %v824_v23 = vmax.f32 %v820_v22, 0.0 }
 0x6ac   :  { %1118 = vmatprep.subr.mxu1 %v824_v23  ;;  %v837_v33 = vpop.permute.xlu1 %836 }
 0x6ad   :  { %1119 = vmatpush3.msra.mxu1 %v824_v23  ;;  %v819_v24 = vld [vmem:[#allocation2 + $0x10] sm:$0xff] }
 0x6ae   :  { %v823_v25 = vmax.f32 %v819_v24, 0.0 }
 0x6b0   :  { %1120 = vmatprep.subr.mxu1 %v823_v25  ;;  %v847_v40 = vpop.permute.xlu1 %846 }
 0x6b1   :  { %1121 = vmatpush3.msra.mxu1 %v823_v25  ;;  %v818_v26 = vld [vmem:[#allocation2 + $0x8] sm:$0xff] }
 0x6b2   :  { %v822_v28 = vmax.f32 %v818_v26, 0.0 }
 0x6b4   :  { %1122 = vmatprep.subr.mxu1 %v822_v28 }
 0x6b5   :  { %1123 = vmatpush3.msra.mxu1 %v822_v28 }
 0x6b6   :  { %1124 = vmatprep.subr.mxu1 %v821_v29  ;;  %v832_v34 = vpop.permute.xlu0 %831 }
 0x6b7   :  { %1125 = vmatpush3.msra.mxu1 %v821_v29 }
 0x6b8   :  { %1127 = vmatmul.mubr.msk.f32.vlgmr.msra.gmra.mxu1 %vm113_vm0, %v814_v30 }
 0x6b9   :  { %1129 = vmatprep.mubr.msk.f32.mxu1 %vm113_vm0, %v815_v31 }
 0x6ba   :  { %v842_v44 = vpop.permute.xlu0 %841 }
 0x6bc   :  { %1130 = vmatmul.mubr.msk.f32.gmra.mxu1 %vm113_vm0, %v816_v32 }
 0x778   :  { %v1128_v35 = vpop.f32.mrf.mxu1 }
 0x779   :  { %v933_v36 = vadd.f32 %v1128_v35, %v837_v33 }
 0x77a   :  { %v927_v37 = vpop.f32.mrf.mxu1 }
 0x77b   :  { %v947_v38 = vadd.f32 %v933_v36, %v1228_v2  ;;  %v928_v39 = vadd.f32 %v927_v37, %v832_v34 }
 0x77c   :  { %v1131_v41 = vpop.f32.mrf.mxu1 }
 0x77d   :  { %951 = vst.msk [vmem:[#allocation3 + $0x8] sm:$0xff] %vm113_vm0, %v947_v38  ;;  %v946_v42 = vadd.f32 %v928_v39, %v1238_v7  ;;  %v943_v43 = vadd.f32 %v1131_v41, %v847_v40 }
 0x77e   :  { %v937_v45 = vpop.f32.mrf.mxu1 }
 0x77f   :  { %950 = vst.msk [vmem:[#allocation3] sm:$0xff] %vm113_vm0, %v946_v42  ;;  %v949_v46 = vadd.f32 %v943_v43, %v1218_v0  ;;  %v938_v47 = vadd.f32 %v937_v45, %v842_v44 }
 0x781   :  { %953 = vst.msk [vmem:[#allocation3 + $0x18] sm:$0xff] %vm113_vm0, %v949_v46  ;;  %v948_v2 = vadd.f32 %v938_v47, %v1223_v1 }
 0x783   :  { %952 = vst.msk [vmem:[#allocation3 + $0x10] sm:$0xff] %vm113_vm0, %v948_v2 }
 0x784   :  { %1168 = shalt.err (!%p1165_p4)
}
 0x785   :  { %s1183_s13 = smov 128   ;;  %s1184_s1 = smov 8  }
 0x786   :  { %965 = dma.vmem_to_hbm [thread:$0]  %s960_s12, 512, %s1415_s5, [#allocation4], %s1183_s13, %s1183_s13, %s1184_s1  }
 0x787   :  { %1177 = dma.done.wait [#allocation4], 512  }
 0x788   :  { %1178 = vsyncadd [#allocation4], 4294966784 }
 0x789   :  { %969 = vsyncpa [#allocation4], 1 }

</bundles_post_ra>
